<compile_context>
chip_gen: v7x
topology: tpu7x:2x2x1
jax: 0.10.0
libtpu: 0.0.40
codegen_flags: <defaults>
</compile_context>

<pallas_src>
import jax
import jax.numpy as jnp
from jax.experimental import pallas as pl
from jax.experimental.pallas import tpu as pltpu


def mlp_kernel(x_ref, w1_ref, b1_ref, w2_ref, b2_ref, o_ref):
    # x_ref : (1, N)       input, batch on lanes
    # w1_ref: (LAYER, 1)   torch layer.weight   (INPUT == 1)
    # b1_ref: (LAYER, 1)   torch layer.bias
    # w2_ref: (LAYER, 1)   torch output.weight reshaped (OUTPUT == 1)
    # b2_ref: (1, 1)       torch output.bias, lives in SMEM
    # o_ref : (1, N)       output, batch on lanes
    x = x_ref[...]                                            # (1, N)
    # First Linear + ReLU: pure VPU broadcast multiply-add.
    h = jnp.maximum(w1_ref[...] * x + b1_ref[...], 0.0)       # (LAYER, N)
    # Second Linear: elementwise scale + 32-deep sublane reduction (XLU).
    y = jnp.sum(w2_ref[...] * h, axis=0, keepdims=True)       # (1, N)
    o_ref[...] = (y + b2_ref[0, 0]).astype(o_ref.dtype)


def net_forward(x, w1, b1, w2, b2):
    """Forward pass of Net.

    x : (N, INPUT)       PyTorch batch-major input, INPUT == 1
    w1: (LAYER, INPUT)   torch layer.weight
    b1: (LAYER,)         torch layer.bias
    w2: (OUTPUT, LAYER)  torch output.weight, OUTPUT == 1
    b2: (OUTPUT,)        torch output.bias
    returns (N, OUTPUT)
    """
    N, INPUT = x.shape
    LAYER = w1.shape[0]
    OUTPUT = w2.shape[0]
    assert INPUT == 1 and OUTPUT == 1, "kernel is specialized to INPUT=OUTPUT=1"
    assert N % 128 == 0, "batch must be a multiple of 128 (lane width)"

    # Lane-dense layout: batch on the last (lane) axis.
    x_t = x.reshape(1, N)
    w1_c = w1.reshape(LAYER, 1)
    b1_c = b1.reshape(LAYER, 1)
    w2_c = w2.reshape(LAYER, 1)   # (1, LAYER) -> (LAYER, 1), same elements
    b2_c = b2.reshape(1, 1)

    y_t = pl.pallas_call(
        mlp_kernel,
        out_shape=jax.ShapeDtypeStruct((1, N), x.dtype),
        grid_spec=pltpu.PrefetchScalarGridSpec(
            num_scalar_prefetch=0,
            grid=(1,),  # whole batch in a single grid step (everything fits VMEM)
            in_specs=[
                pl.BlockSpec((1, N), lambda i: (0, 0)),        # x (lane-dense)
                pl.BlockSpec((LAYER, 1), lambda i: (0, 0)),    # w1
                pl.BlockSpec((LAYER, 1), lambda i: (0, 0)),    # b1
                pl.BlockSpec((LAYER, 1), lambda i: (0, 0)),    # w2
                # single scalar bias -> SMEM: no padded VMEM tile / DMA stream
                pl.BlockSpec(memory_space=pltpu.MemorySpace.SMEM),
            ],
            out_specs=pl.BlockSpec((1, N), lambda i: (0, 0)),  # lane-dense output
        ),
        compiler_params=pltpu.CompilerParams(
            # One step today; keeping the batch axis "parallel" means a
            # reintroduced grid at larger N shards across v7x's two TCs.
            dimension_semantics=("parallel",),
        ),
    )(x_t, w1_c, b1_c, w2_c, b2_c)

    return y_t.reshape(N, OUTPUT)


if __name__ == "__main__":
    # Shapes implied by the module's usage: x = linspace(-1, 1) unsqueezed -> (N, 1)
    N, INPUT, LAYER, OUTPUT = 256, 1, 32, 1

    key = jax.random.PRNGKey(0)
    k1, k2, k3, k4 = jax.random.split(key, 4)

    # Deterministic parameter init (uniform, PyTorch-Linear-style bounds),
    # stored in PyTorch layout: weight is (out_features, in_features).
    bound1 = 1.0 / (INPUT ** 0.5)
    bound2 = 1.0 / (LAYER ** 0.5)
    w1 = jax.random.uniform(k1, (LAYER, INPUT), jnp.float32, -bound1, bound1)
    b1 = jax.random.uniform(k2, (LAYER,), jnp.float32, -bound1, bound1)
    w2 = jax.random.uniform(k3, (OUTPUT, LAYER), jnp.float32, -bound2, bound2)
    b2 = jax.random.uniform(k4, (OUTPUT,), jnp.float32, -bound2, bound2)

    # Input mirroring the reference script: linspace(-1, 1) with a feature dim.
    x = jnp.linspace(-1.0, 1.0, N, dtype=jnp.float32).reshape(N, INPUT)

    y = net_forward(x, w1, b1, w2, b2)
    y = jax.block_until_ready(y)

    # Cross-check against a pure-JAX reference of the same forward pass
    # (PyTorch semantics: x @ W^T + b).
    y_ref = jnp.maximum(x @ w1.T + b1, 0.0) @ w2.T + b2
    assert y.shape == (N, OUTPUT)
    assert jnp.allclose(y, y_ref, atol=1e-5, rtol=1e-5)

    print("KERNEL_OK")
</pallas_src>

<mosaic_0001>
module attributes {stable_mosaic.version = 11 : i64} {
  func.func @mlp_kernel(%arg0: i32, %arg1: memref<1x256xf32, #tpu.memory_space<vmem>>, %arg2: memref<32x1xf32, #tpu.memory_space<vmem>>, %arg3: memref<32x1xf32, #tpu.memory_space<vmem>>, %arg4: memref<32x1xf32, #tpu.memory_space<vmem>>, %arg5: memref<1x1xf32, #tpu.memory_space<smem>>, %arg6: memref<1x256xf32, #tpu.memory_space<vmem>>) attributes {dimension_semantics = [#tpu.dimension_semantics<parallel>], iteration_bounds = array<i64: 1>, scalar_prefetch = 0 : i64, scratch_operands = 0 : i64, tpu.core_type = #tpu.core_type<tc>, window_params = [{pipeline_mode = #tpu.pipeline_mode<synchronous>, transform_indices = @transform_0, window_bounds = array<i64: 1, 256>}, {pipeline_mode = #tpu.pipeline_mode<synchronous>, transform_indices = @transform_1, window_bounds = array<i64: 32, 1>}, {pipeline_mode = #tpu.pipeline_mode<synchronous>, transform_indices = @transform_2, window_bounds = array<i64: 32, 1>}, {pipeline_mode = #tpu.pipeline_mode<synchronous>, transform_indices = @transform_3, window_bounds = array<i64: 32, 1>}, {transform_indices = @transform_4, window_bounds = array<i64: 1, 1>}, {pipeline_mode = #tpu.pipeline_mode<synchronous>, transform_indices = @transform_5, window_bounds = array<i64: 1, 256>}]} {
    %c0 = arith.constant 0 : index
    %c0_0 = arith.constant 0 : index
    %0 = vector.load %arg1[%c0, %c0_0] : memref<1x256xf32, #tpu.memory_space<vmem>>, vector<1x256xf32>
    %c0_1 = arith.constant 0 : index
    %c0_2 = arith.constant 0 : index
    %1 = vector.load %arg2[%c0_1, %c0_2] : memref<32x1xf32, #tpu.memory_space<vmem>>, vector<32x1xf32>
    %2 = vector.broadcast %1 : vector<32x1xf32> to vector<32x256xf32>
    %3 = vector.broadcast %0 : vector<1x256xf32> to vector<32x256xf32>
    %4 = arith.mulf %2, %3 : vector<32x256xf32>
    %c0_3 = arith.constant 0 : index
    %c0_4 = arith.constant 0 : index
    %5 = vector.load %arg3[%c0_3, %c0_4] : memref<32x1xf32, #tpu.memory_space<vmem>>, vector<32x1xf32>
    %6 = vector.broadcast %5 : vector<32x1xf32> to vector<32x256xf32>
    %7 = arith.addf %4, %6 : vector<32x256xf32>
    %cst = arith.constant 0.000000e+00 : f32
    %8 = vector.broadcast %cst : f32 to vector<32x256xf32>
    %9 = arith.maximumf %7, %8 : vector<32x256xf32>
    %c0_5 = arith.constant 0 : index
    %c0_6 = arith.constant 0 : index
    %10 = vector.load %arg4[%c0_5, %c0_6] : memref<32x1xf32, #tpu.memory_space<vmem>>, vector<32x1xf32>
    %11 = vector.broadcast %10 : vector<32x1xf32> to vector<32x256xf32>
    %12 = arith.mulf %11, %9 : vector<32x256xf32>
    %cst_7 = arith.constant dense<0.000000e+00> : vector<256xf32>
    %13 = vector.multi_reduction <add>, %12, %cst_7 [0] : vector<32x256xf32> to vector<256xf32>
    %14 = vector.shape_cast %13 : vector<256xf32> to vector<1x256xf32>
    %c0_8 = arith.constant 0 : index
    %c0_9 = arith.constant 0 : index
    %15 = memref.load %arg5[%c0_8, %c0_9] : memref<1x1xf32, #tpu.memory_space<smem>>
    %16 = vector.broadcast %15 : f32 to vector<1x256xf32>
    %17 = arith.addf %14, %16 : vector<1x256xf32>
    %c0_10 = arith.constant 0 : index
    %c0_11 = arith.constant 0 : index
    %18 = vector.load %arg6[%c0_10, %c0_11] : memref<1x256xf32, #tpu.memory_space<vmem>>, vector<1x256xf32>
    tpu.vector_store %arg6[%c0_10, %c0_11], %17 {strides = array<i32>} : memref<1x256xf32, #tpu.memory_space<vmem>>, vector<1x256xf32>,
    return
  }
  func.func @transform_0(%arg0: i32) -> (i32, i32) {
    %c0_i32 = arith.constant 0 : i32
    %c0_i32_0 = arith.constant 0 : i32
    %c0_i32_1 = arith.constant 0 : i32
    return %c0_i32, %c0_i32_0 : i32, i32
  }
  func.func @transform_1(%arg0: i32) -> (i32, i32) {
    %c0_i32 = arith.constant 0 : i32
    %c0_i32_0 = arith.constant 0 : i32
    %c0_i32_1 = arith.constant 0 : i32
    return %c0_i32, %c0_i32_0 : i32, i32
  }
  func.func @transform_2(%arg0: i32) -> (i32, i32) {
    %c0_i32 = arith.constant 0 : i32
    %c0_i32_0 = arith.constant 0 : i32
    %c0_i32_1 = arith.constant 0 : i32
    return %c0_i32, %c0_i32_0 : i32, i32
  }
  func.func @transform_3(%arg0: i32) -> (i32, i32) {
    %c0_i32 = arith.constant 0 : i32
    %c0_i32_0 = arith.constant 0 : i32
    %c0_i32_1 = arith.constant 0 : i32
    return %c0_i32, %c0_i32_0 : i32, i32
  }
  func.func @transform_4(%arg0: i32) -> (i32, i32) {
    %c0_i32 = arith.constant 0 : i32
    %c0_i32_0 = arith.constant 0 : i32
    %c0_i32_1 = arith.constant 0 : i32
    return %c0_i32, %c0_i32_0 : i32, i32
  }
  func.func @transform_5(%arg0: i32) -> (i32, i32) {
    %c0_i32 = arith.constant 0 : i32
    %c0_i32_0 = arith.constant 0 : i32
    %c0_i32_1 = arith.constant 0 : i32
    return %c0_i32, %c0_i32_0 : i32, i32
  }
}

</mosaic_0001>

<bundles_post_ra>
// kernel: tpu_custom_call.1
= control target key start
LH: loop header
LB: loop body
LE: loop exit
PB: predicated region body
PF: predicated region fallthrough
CT: control target
= control target key end

     0   :  { %v226_v2 = vmov 0   ;;  %s320_s0 = inlined_call_operand.vmem [shape: f32[1,256], index: 0, kind: input, shape index: {}]   ;;  %s321_s1 = inlined_call_operand.vmem [shape: f32[32,1], index: 1, kind: input, shape index: {}]   ;;  %s322_s2 = inlined_call_operand.vmem [shape: f32[32,1], index: 2, kind: input, shape index: {}]   ;;  %s323_s3 = inlined_call_operand.vmem [shape: f32[32,1], index: 3, kind: input, shape index: {}]   ;;  %s324_s4 = inlined_call_operand.<no memory space> [shape: f32[1,1], index: 4, kind: input, shape index: {}]   ;;  %s325_s5 = inlined_call_operand.hbm [shape: f32[1,256], index: 5, kind: output, shape index: {}]  }
   0x1   :  { %v25_v0 = vld [vmem:[%s321_s1 + $0x10] sm:$0xff]  ;;  %v23_v1 = vld [vmem:[%s321_s1] sm:$0xff]  ;;  %201 = vset.pattern.permute.xlu1 %v226_v2  ;;  %200 = vset.pattern.permute.xlu0 %v226_v2  ;;  %v24_v4 = vld [vmem:[%s321_s1 + $0x8] sm:$0xff] }
   0x2   :  { %39 = vperm.xlu1 %201, %v25_v0   ;;  %29 = vperm.xlu0 %200, %v23_v1   ;;  %v66_v3 = vld [vmem:[%s322_s2] sm:$0xff] }
   0x3   :  { %11 = vsyncpa [#allocation4], 0  ;;  %v26_v5 = vld [vmem:[%s321_s1 + $0x18] sm:$0xff]  ;;  %v67_v6 = vld [vmem:[%s322_s2 + $0x8] sm:$0xff]  ;;  %v48_v13 = vlaneseq  ;;  %s228_s17 = smov [#allocation3]  }
   0x4   :  { %v69_v7 = vld [vmem:[%s322_s2 + $0x18] sm:$0xff]  ;;  %v68_v8 = vld [vmem:[%s322_s2 + $0x10] sm:$0xff]  ;;  %v107_v9 = vld [vmem:[%s323_s3 + $0x8] sm:$0xff]  ;;  %s189_s18 = sshll.u32 %s228_s17, 4  ;;  %s190_s18 = int_to_ptr.vmem [resolvable:$true] %s189_s18 }
   0x5   :  { %v106_v10 = vld [vmem:[%s323_s3] sm:$0xff]  ;;  %v109_v11 = vld [vmem:[%s323_s3 + $0x18] sm:$0xff]  ;;  %v108_v12 = vld [vmem:[%s323_s3 + $0x10] sm:$0xff]  ;;  %v296_v14 = vshrl.u32 %v48_v13, 7  ;;  %vm180_vm0 = vcmp.lt.s32.totalorder %v48_v13, 256  ;;  %s202_s19 = scalar_lea.vmem %s190_s18, 32  ;;  %p207_p1 = scmp.lt.s32.totalorder %s190_s18, %s190_s18 }
   0x6   :  { %72 = vperm.xlu1 %201, %v66_v3   ;;  %34 = vperm.xlu0 %200, %v24_v4   ;;  %v22_v19 = vld [vmem:[%s320_s0] sm:$0x3]  ;;  %p203_p0 = scmp.ne.s32.totalorder %s190_s18, %s202_s19  ;;  %p208_p2 = scmp.lt.s32.totalorder %s202_s19, %s202_s19 }
   0x7   :  { %v50_v15 = vsub.s32 0, %v296_v14  ;;  %v54_v16 = vsub.s32 1, %v296_v14 }
   0x8   :  { %p209_p3 = por %p208_p2, %p207_p1 }
   0x9   :  { %v51_v20 = vrot.slane %v22_v19, %v50_v15  ;;  %v55_v21 = vrot.slane %v22_v19, %v54_v16 }
   0xa   :  { %44 = vperm.xlu1 %201, %v26_v5   ;;  %77 = vperm.xlu0 %200, %v67_v6   ;;  %p210_p4 = pnand %p209_p3, %p203_p0 }
   0xe   :  { %87 = vperm.xlu1 %201, %v69_v7   ;;  %82 = vperm.xlu0 %200, %v68_v8  }
  0x12   :  { %117 = vperm.xlu1 %201, %v107_v9   ;;  %112 = vperm.xlu0 %200, %v106_v10  }
  0x16   :  { %127 = vperm.xlu1 %201, %v109_v11   ;;  %122 = vperm.xlu0 %200, %v108_v12   ;;  %v227_v12 = vmov 1966171168  }
  0x17   :  { %v164_v15 = vunpack.c.l.s4 %v227_v12 }
  0x81   :  { %v40_v17 = vpop.permute.xlu1 %39  ;;  %v30_v18 = vpop.permute.xlu0 %29 }
  0x82   :  { %v58_v24 = vmul.f32 %v51_v20, %v30_v18  ;;  %v59_v25 = vmul.f32 %v55_v21, %v30_v18  ;;  %v62_v36 = vmul.f32 %v51_v20, %v40_v17  ;;  %v63_v37 = vmul.f32 %v55_v21, %v40_v17 }
  0x85   :  { %v73_v22 = vpop.permute.xlu1 %72  ;;  %v35_v23 = vpop.permute.xlu0 %34 }
  0x86   :  { %v60_v28 = vmul.f32 %v51_v20, %v35_v23  ;;  %v61_v29 = vmul.f32 %v55_v21, %v35_v23  ;;  %v90_v30 = vadd.f32 %v73_v22, %v58_v24  ;;  %v91_v31 = vadd.f32 %v73_v22, %v59_v25 }
  0x88   :  { %v98_v38 = vmax.f32 %v90_v30, 0.0  ;;  %v99_v39 = vmax.f32 %v91_v31, 0.0 }
  0x89   :  { %v45_v26 = vpop.permute.xlu1 %44  ;;  %v78_v27 = vpop.permute.xlu0 %77 }
  0x8a   :  { %v92_v32 = vadd.f32 %v78_v27, %v60_v28  ;;  %v93_v33 = vadd.f32 %v78_v27, %v61_v29  ;;  %v64_v40 = vmul.f32 %v51_v20, %v45_v26  ;;  %v65_v41 = vmul.f32 %v55_v21, %v45_v26 }
  0x8b   :  { %v165_v20 = vunpack.c.0.s8 %v164_v15  ;;  %v157_v21 = vstv %s324_s4 }
  0x8c   :  { %v100_v42 = vmax.f32 %v92_v32, 0.0  ;;  %v101_v43 = vmax.f32 %v93_v33, 0.0 }
  0x8d   :  { %v88_v34 = vpop.permute.xlu1 %87  ;;  %v83_v35 = vpop.permute.xlu0 %82  ;;  %v168_v26 = vsub.s32 %v165_v20, %v296_v14 }
  0x8e   :  { %v94_v44 = vadd.f32 %v83_v35, %v62_v36  ;;  %v95_v45 = vadd.f32 %v83_v35, %v63_v37  ;;  %v96_v46 = vadd.f32 %v88_v34, %v64_v40  ;;  %v97_v47 = vadd.f32 %v88_v34, %v65_v41 }
  0x90   :  { %v102_v54 = vmax.f32 %v94_v44, 0.0  ;;  %v103_v55 = vmax.f32 %v95_v45, 0.0  ;;  %v104_v56 = vmax.f32 %v96_v46, 0.0  ;;  %v105_v57 = vmax.f32 %v97_v47, 0.0 }
  0x91   :  { %v118_v48 = vpop.permute.xlu1 %117  ;;  %v113_v49 = vpop.permute.xlu0 %112 }
  0x92   :  { %v132_v50 = vmul.f32 %v118_v48, %v100_v42  ;;  %v133_v51 = vmul.f32 %v118_v48, %v101_v43  ;;  %v130_v52 = vmul.f32 %v113_v49, %v98_v38  ;;  %v131_v53 = vmul.f32 %v113_v49, %v99_v39 }
  0x94   :  { %v138_v60 = vadd.f32 %v132_v50, %v130_v52  ;;  %v147_v61 = vadd.f32 %v133_v51, %v131_v53 }
  0x95   :  { %v128_v58 = vpop.permute.xlu1 %127  ;;  %v123_v59 = vpop.permute.xlu0 %122 }
  0x96   :  { %v134_v62 = vmul.f32 %v123_v59, %v102_v54  ;;  %v135_v63 = vmul.f32 %v123_v59, %v103_v55  ;;  %v136_v0 = vmul.f32 %v128_v58, %v104_v56  ;;  %v137_v1 = vmul.f32 %v128_v58, %v105_v57 }
  0x98   :  { %v139_v2 = vadd.f32 %v138_v60, %v134_v62  ;;  %v148_v3 = vadd.f32 %v147_v61, %v135_v63 }
  0x9a   :  { %v140_v4 = vadd.f32 %v139_v2, %v136_v0  ;;  %v149_v5 = vadd.f32 %v148_v3, %v137_v1 }
  0x9c   :  { %v141_v6 = vrot.slane %v140_v4, 4  ;;  %v150_v7 = vrot.slane %v149_v5, 4 }
  0x9e   :  { %v142_v8 = vadd.f32 %v141_v6, %v140_v4  ;;  %v151_v9 = vadd.f32 %v150_v7, %v149_v5 }
  0xa0   :  { %v143_v10 = vrot.slane %v142_v8, 2  ;;  %v152_v11 = vrot.slane %v151_v9, 2 }
  0xa2   :  { %v144_v16 = vadd.f32 %v143_v10, %v142_v8  ;;  %v153_v17 = vadd.f32 %v152_v11, %v151_v9 }
  0xa4   :  { %v145_v18 = vrot.slane %v144_v16, 1  ;;  %v154_v19 = vrot.slane %v153_v17, 1 }
  0xa6   :  { %v146_v22 = vadd.f32 %v145_v18, %v144_v16  ;;  %v155_v23 = vadd.f32 %v154_v19, %v153_v17 }
  0xa8   :  { %v158_v24 = vadd.f32 %v157_v21, %v146_v22  ;;  %v159_v25 = vadd.f32 %v157_v21, %v155_v23 }
  0xaa   :  { %v162_v27 = vcombine.low %v158_v24, %v159_v25 }
  0xac   :  { %v169_v28 = vrot.slane %v162_v27, %v168_v26 }
  0xae   :  { %v176_v29 = vrot.slane %v169_v28, %v168_v26 }
  0xb0   :  { %182 = vst.msk [vmem:[#allocation3] sm:$0x3] %vm180_vm0, %v176_v29 }
  0xb1   :  { %213 = shalt.err (!%p210_p4)
}
  0xb2   :  { %s214_s21 = scalar_lea.hbm %s325_s5, 32 }
  0xb3   :  { %p215_p5 = scmp.ne.s32.totalorder %s325_s5, %s214_s21  ;;  %p218_p6 = scmp.lt.u32.totalorder %s214_s21, %s325_s5 }
  0xb5   :  { %p220_p7 = pnand %p218_p6, %p215_p5 }
  0xb7   :  { %223 = shalt.err (!%p220_p7)
}
  0xb8   :  { %192 = dma.vmem_to_hbm [thread:$0]  %s190_s18, 32, %s325_s5, [#allocation4]  }
  0xb9   :  { %224 = dma.done.wait [#allocation4], 32  }
  0xba   :  { %225 = vsyncadd [#allocation4], 4294967264 }
  0xbb   :  { %196 = vsyncpa [#allocation4], 1 }

</bundles_post_ra>
